<compile_context>
chip_gen: v6e
topology: v6e:2x2x1
jax: 0.10.0
libtpu: 0.0.40
codegen_flags: <defaults>
</compile_context>

<pallas_src>
import functools

import numpy as np
import jax
import jax.numpy as jnp
from jax import lax
from jax.experimental import pallas as pl
from jax.experimental.pallas import tpu as pltpu

S = 7             # 7x7 grid
C = 30            # 2 boxes * 5 + 20 classes
CHUNK = 256       # cells per inner-loop step (multiple of 128)
TILE_ROWS = 8192  # cells per grid step (multiple of CHUNK)


def _round_up(a, b):
    return (a + b - 1) // b * b


def _cdiv(a, b):
    return (a + b - 1) // b


def _iou(b1cx, b1cy, b1w, b1h, b2cx, b2cy, b2w, b2h):
    """Vectorized calculate_iou on lane-dense [1, R] rows."""
    area1 = b1w * b1h
    area2 = b2w * b2h
    max_left = jnp.maximum(b1cx - 0.5 * b1w, b2cx - 0.5 * b2w)
    min_right = jnp.minimum(b1cx + 0.5 * b1w, b2cx + 0.5 * b2w)
    max_top = jnp.maximum(b1cy - 0.5 * b1h, b2cy - 0.5 * b2h)
    min_bottom = jnp.minimum(b1cy + 0.5 * b1h, b2cy + 0.5 * b2h)
    inter = (min_right - max_left) * (min_bottom - max_top)
    union = area1 + area2 - inter
    # EUP approximate reciprocal (free slot) + one Newton step: keeps the
    # responsible-box tie-break numerically faithful to exact division.
    r = pl.reciprocal(union, approx=True)
    r = r * (2.0 - union * r)
    no_overlap = jnp.logical_or(max_left >= min_right, max_top >= min_bottom)
    # Degenerate / garbage lanes (zero boxes, masked tail cells) always take
    # the no_overlap branch, so any inf/NaN from 1/0 never escapes the select.
    return jnp.where(no_overlap, 0.0, inter * r)


def _cell_losses(tp, tl, cell0, m_total):
    """Per-cell YOLO loss for a channels-on-sublanes chunk.

    tp, tl: [C, R] float32 (preds / labels; channels on sublanes, cells on
    lanes).  cell0: global cell index of lane 0.  Returns [1, R] with
    out-of-range lanes masked to zero.
    """
    r = tp.shape[1]
    inv7 = jnp.float32(1.0 / 7.0)

    # IoU of each predicted box against the label box.  The per-cell (+x)/7,
    # (+y)/7 offsets of the reference shift both boxes equally and cancel, so
    # only the /7 scaling of the centers is applied.
    iou1 = _iou(tp[0:1] * inv7, tp[1:2] * inv7, tp[2:3], tp[3:4],
                tl[0:1] * inv7, tl[1:2] * inv7, tl[2:3], tl[3:4])
    iou2 = _iou(tp[5:6] * inv7, tp[6:7] * inv7, tp[7:8], tp[8:9],
                tl[0:1] * inv7, tl[1:2] * inv7, tl[2:3], tl[3:4])
    resp1 = iou1 > iou2                        # box 1 responsible (ties -> box 2)

    d2 = (tp - tl) ** 2                        # [C, R]
    xy1 = 5.0 * jnp.sum(d2[0:2], axis=0, keepdims=True)
    xy2 = 5.0 * jnp.sum(d2[5:7], axis=0, keepdims=True)
    cls = jnp.sum(d2[10:30], axis=0, keepdims=True)

    # Clamp before sqrt: identical to the reference for valid (>=0) inputs and
    # keeps NaNs from garbage tail lanes out of the selected branches.
    wh1 = jnp.sum((jnp.sqrt(jnp.maximum(tp[2:4], 0.0)) -
                   jnp.sqrt(jnp.maximum(tl[2:4], 0.0))) ** 2,
                  axis=0, keepdims=True)
    wh2 = jnp.sum((jnp.sqrt(jnp.maximum(tp[7:9], 0.0)) -
                   jnp.sqrt(jnp.maximum(tl[7:9], 0.0))) ** 2,
                  axis=0, keepdims=True)

    p4 = tp[4:5]
    p9 = tp[9:10]
    obj1 = (p4 - iou1) ** 2
    obj2 = (p9 - iou2) ** 2

    obj_cell = jnp.where(resp1,
                         xy1 + wh1 + obj1 + 0.5 * obj2,
                         xy2 + wh2 + obj2 + 0.5 * obj1) + cls
    noobj_cell = 0.5 * (p4 * p4 + p9 * p9)

    has_obj = tl[4:5] == 1.0                   # exact flag, matches reference
    cell_loss = jnp.where(has_obj, obj_cell, noobj_cell)      # [1, R]

    # Mask cells past the true extent (ragged last block / chunk).
    idx = cell0 + lax.broadcasted_iota(jnp.int32, (1, r), 1)
    return jnp.where(idx < m_total, cell_loss, 0.0)


def _accumulate_and_store(o_ref, nchunks, body, r):
    acc = lax.fori_loop(0, nchunks, body, jnp.zeros((1, r), jnp.float32))
    total = jnp.sum(acc).reshape(1, 1)
    o_ref[...] = jnp.broadcast_to(total, (8, 128))


def _yolo_kernel_rows(p_ref, l_ref, o_ref, *, m_total, tm, chunk):
    """Natural-layout kernel: blocks are [tm, C] (cells on sublanes)."""
    tile = pl.program_id(0)

    def body(ci, acc):
        r0 = pl.multiple_of(ci * chunk, chunk)
        tp = jnp.transpose(p_ref[pl.ds(r0, chunk), :])     # [C, chunk] via XLU
        tl = jnp.transpose(l_ref[pl.ds(r0, chunk), :])
        return acc + _cell_losses(tp, tl, tile * tm + r0, m_total)

    _accumulate_and_store(o_ref, tm // chunk, body, chunk)


def _yolo_kernel_cols(p_ref, l_ref, o_ref, *, m_total, tm, chunk):
    """Fallback kernel: blocks are [C, tm] (wrapper-transposed feed)."""
    tile = pl.program_id(0)

    def body(ci, acc):
        c0 = pl.multiple_of(ci * chunk, chunk)
        tp = p_ref[:, pl.ds(c0, chunk)]
        tl = l_ref[:, pl.ds(c0, chunk)]
        return acc + _cell_losses(tp, tl, tile * tm + c0, m_total)

    _accumulate_and_store(o_ref, tm // chunk, body, chunk)


def _partial_sums_to_loss(out, g, n):
    return jnp.sum(out.reshape(g, 8, 128)[:, 0, 0]) / n


@jax.jit
def _yolo_loss_natural(preds, labels):
    n = preds.shape[0]
    m = n * S * S
    p2 = jnp.reshape(preds, (m, C)).astype(jnp.float32)   # free reshape
    l2 = jnp.reshape(labels, (m, C)).astype(jnp.float32)

    tm = min(TILE_ROWS, (m // CHUNK) * CHUNK)              # multiple of CHUNK, <= m
    g = _cdiv(m, tm)

    out = pl.pallas_call(
        functools.partial(_yolo_kernel_rows, m_total=m, tm=tm, chunk=CHUNK),
        out_shape=jax.ShapeDtypeStruct((8 * g, 128), jnp.float32),
        grid=(g,),
        in_specs=[pl.BlockSpec((tm, C), lambda i: (i, 0)),
                  pl.BlockSpec((tm, C), lambda i: (i, 0))],
        out_specs=pl.BlockSpec((8, 128), lambda i: (i, 0)),
        compiler_params=pltpu.CompilerParams(
            dimension_semantics=("parallel",),
            # (tm, 30) blocks are lane-padded to 128 in VMEM (~4 MiB each);
            # raise the scoped limit so v5e's 16 MiB default is not a problem.
            vmem_limit_bytes=32 * 1024 * 1024),
    )(p2, l2)
    return _partial_sums_to_loss(out, g, n)


@jax.jit
def _yolo_loss_transposed(preds, labels):
    n = preds.shape[0]
    m = n * S * S
    tm = min(TILE_ROWS, _round_up(m, CHUNK))
    m_pad = _round_up(m, tm)
    g = m_pad // tm

    def prep(x):
        x2 = jnp.reshape(x, (m, C)).astype(jnp.float32)
        x2 = jnp.pad(x2, ((0, m_pad - m), (0, 0)))         # no channel pad
        return jnp.transpose(x2)                           # [C, m_pad]

    out = pl.pallas_call(
        functools.partial(_yolo_kernel_cols, m_total=m, tm=tm, chunk=CHUNK),
        out_shape=jax.ShapeDtypeStruct((8 * g, 128), jnp.float32),
        grid=(g,),
        in_specs=[pl.BlockSpec((C, tm), lambda i: (0, i)),
                  pl.BlockSpec((C, tm), lambda i: (0, i))],
        out_specs=pl.BlockSpec((8, 128), lambda i: (i, 0)),
        compiler_params=pltpu.CompilerParams(
            dimension_semantics=("parallel",)),
    )(prep(preds), prep(labels))
    return _partial_sums_to_loss(out, g, n)


def _probe_transpose_kernel(x_ref, o_ref):
    o_ref[...] = jnp.transpose(x_ref[...])


_NATURAL_OK = None


def _natural_layout_supported():
    """Probe whether Mosaic lowers the in-kernel [CHUNK, C] -> [C, CHUNK]
    transpose used by the natural-layout kernel on this jax/libtpu build."""
    global _NATURAL_OK
    if _NATURAL_OK is None:
        try:
            x = jnp.arange(CHUNK * C, dtype=jnp.float32).reshape(CHUNK, C)
            y = pl.pallas_call(
                _probe_transpose_kernel,
                out_shape=jax.ShapeDtypeStruct((C, CHUNK), jnp.float32),
            )(x)
            _NATURAL_OK = bool(jnp.all(y == x.T))
        except Exception:
            _NATURAL_OK = False
    return _NATURAL_OK


def yolo_loss(preds, labels):
    """preds, labels: [N, 7, 7, 30] float32. Returns the scalar YOLOv1 loss."""
    global _NATURAL_OK
    m = preds.shape[0] * S * S
    if m >= CHUNK and _natural_layout_supported():
        try:
            return _yolo_loss_natural(preds, labels)
        except Exception:                      # safety net: never fail to run
            _NATURAL_OK = False
    return _yolo_loss_transposed(preds, labels)


def yolo_loss_ref(preds, labels):
    """NumPy port of the PyTorch reference (loops + calculate_iou)."""
    preds = np.asarray(preds, np.float64)
    labels = np.asarray(labels, np.float64)
    n_b = preds.shape[0]

    def iou(b1, b2):
        area1 = b1[2] * b1[3]
        area2 = b2[2] * b2[3]
        max_left = max(b1[0] - b1[2] / 2, b2[0] - b2[2] / 2)
        min_right = min(b1[0] + b1[2] / 2, b2[0] + b2[2] / 2)
        max_top = max(b1[1] - b1[3] / 2, b2[1] - b2[3] / 2)
        min_bottom = min(b1[1] + b1[3] / 2, b2[1] + b2[3] / 2)
        if max_left >= min_right or max_top >= min_bottom:
            return 0.0
        inter = (min_right - max_left) * (min_bottom - max_top)
        return inter / (area1 + area2 - inter)

    total = 0.0
    for n in range(n_b):
        for x in range(7):
            for y in range(7):
                p = preds[n, x, y]
                l = labels[n, x, y]
                if l[4] == 1:
                    pb1 = [(p[0] + x) / 7, (p[1] + y) / 7, p[2], p[3]]
                    pb2 = [(p[5] + x) / 7, (p[6] + y) / 7, p[7], p[8]]
                    lbb = [(l[0] + x) / 7, (l[1] + y) / 7, l[2], l[3]]
                    iou1 = iou(pb1, lbb)
                    iou2 = iou(pb2, lbb)
                    if iou1 > iou2:
                        total += 5 * np.sum((p[0:2] - l[0:2]) ** 2)
                        total += np.sum((np.sqrt(p[2:4]) - np.sqrt(l[2:4])) ** 2)
                        total += (p[4] - iou1) ** 2
                        total += 0.5 * (p[9] - iou2) ** 2
                    else:
                        total += 5 * np.sum((p[5:7] - l[5:7]) ** 2)
                        total += np.sum((np.sqrt(p[7:9]) - np.sqrt(l[7:9])) ** 2)
                        total += (p[9] - iou2) ** 2
                        total += 0.5 * (p[4] - iou1) ** 2
                    total += np.sum((p[10:] - l[10:]) ** 2)
                else:
                    total += 0.5 * (p[4] ** 2 + p[9] ** 2)
    return total / n_b


if __name__ == "__main__":
    key = jax.random.PRNGKey(0)

    def make_inputs(n, k):
        k1, k2, k3 = jax.random.split(k, 3)
        preds = jax.random.uniform(k1, (n, S, S, C), dtype=jnp.float32,
                                   minval=0.01, maxval=1.0)
        labels = jax.random.uniform(k2, (n, S, S, C), dtype=jnp.float32,
                                    minval=0.01, maxval=1.0)
        obj = (jax.random.uniform(k3, (n, S, S)) > 0.5).astype(jnp.float32)
        labels = labels.at[..., 4].set(obj)    # objectness flag exactly 0 / 1
        return preds, labels

    k_small, k_big = jax.random.split(key)
    # N=2 exercises the small-batch (fallback) path, N=8 the natural-layout
    # path; both are checked against the NumPy port of the PyTorch reference.
    for n, k in ((2, k_small), (8, k_big)):
        preds, labels = make_inputs(n, k)
        loss = jax.block_until_ready(yolo_loss(preds, labels))
        ref = yolo_loss_ref(np.asarray(preds), np.asarray(labels))
        assert np.allclose(float(loss), float(ref), rtol=1e-3, atol=1e-3), \
            (n, float(loss), float(ref))
    print("KERNEL_OK")
</pallas_src>

<mosaic_0001>
module attributes {stable_mosaic.version = 11 : i64} {
  func.func @_yolo_kernel_cols(%arg0: i32, %arg1: memref<30x256xf32, #tpu.memory_space<vmem>>, %arg2: memref<30x256xf32, #tpu.memory_space<vmem>>, %arg3: memref<8x128xf32, #tpu.memory_space<vmem>>) attributes {dimension_semantics = [#tpu.dimension_semantics<parallel>], iteration_bounds = array<i64: 1>, scalar_prefetch = 0 : i64, scratch_operands = 0 : i64, tpu.core_type = #tpu.core_type<tc>, window_params = [{transform_indices = @transform_0, window_bounds = array<i64: 30, 256>}, {transform_indices = @transform_1, window_bounds = array<i64: 30, 256>}, {transform_indices = @transform_2, window_bounds = array<i64: 8, 128>}]} {
    %cst = arith.constant 0.000000e+00 : f32
    %0 = vector.broadcast %cst : f32 to vector<1x256xf32>
    %c0_i32 = arith.constant 0 : i32
    %c256_i32 = arith.constant 256 : i32
    %1 = arith.muli %c0_i32, %c256_i32 : i32
    %2 = tpu.assume_multiple %1, 256 : i32
    %c0 = arith.constant 0 : index
    %3 = arith.index_cast %2 : i32 to index
    %4 = vector.load %arg1[%c0, %3] : memref<30x256xf32, #tpu.memory_space<vmem>>, vector<30x256xf32>
    %c0_0 = arith.constant 0 : index
    %5 = arith.index_cast %2 : i32 to index
    %6 = vector.load %arg2[%c0_0, %5] : memref<30x256xf32, #tpu.memory_space<vmem>>, vector<30x256xf32>
    %c256_i32_1 = arith.constant 256 : i32
    %7 = arith.muli %arg0, %c256_i32_1 : i32
    %8 = arith.addi %7, %2 : i32
    %9 = vector.extract_strided_slice %4 {offsets = [0, 0], sizes = [1, 256], strides = [1, 1]} : vector<30x256xf32> to vector<1x256xf32>
    %cst_2 = arith.constant 0.142857149 : f32
    %10 = vector.broadcast %cst_2 : f32 to vector<1x256xf32>
    %11 = arith.mulf %9, %10 : vector<1x256xf32>
    %12 = vector.extract_strided_slice %4 {offsets = [1, 0], sizes = [1, 256], strides = [1, 1]} : vector<30x256xf32> to vector<1x256xf32>
    %cst_3 = arith.constant 0.142857149 : f32
    %13 = vector.broadcast %cst_3 : f32 to vector<1x256xf32>
    %14 = arith.mulf %12, %13 : vector<1x256xf32>
    %15 = vector.extract_strided_slice %4 {offsets = [2, 0], sizes = [1, 256], strides = [1, 1]} : vector<30x256xf32> to vector<1x256xf32>
    %16 = vector.extract_strided_slice %4 {offsets = [3, 0], sizes = [1, 256], strides = [1, 1]} : vector<30x256xf32> to vector<1x256xf32>
    %17 = vector.extract_strided_slice %6 {offsets = [0, 0], sizes = [1, 256], strides = [1, 1]} : vector<30x256xf32> to vector<1x256xf32>
    %cst_4 = arith.constant 0.142857149 : f32
    %18 = vector.broadcast %cst_4 : f32 to vector<1x256xf32>
    %19 = arith.mulf %17, %18 : vector<1x256xf32>
    %20 = vector.extract_strided_slice %6 {offsets = [1, 0], sizes = [1, 256], strides = [1, 1]} : vector<30x256xf32> to vector<1x256xf32>
    %cst_5 = arith.constant 0.142857149 : f32
    %21 = vector.broadcast %cst_5 : f32 to vector<1x256xf32>
    %22 = arith.mulf %20, %21 : vector<1x256xf32>
    %23 = vector.extract_strided_slice %6 {offsets = [2, 0], sizes = [1, 256], strides = [1, 1]} : vector<30x256xf32> to vector<1x256xf32>
    %24 = vector.extract_strided_slice %6 {offsets = [3, 0], sizes = [1, 256], strides = [1, 1]} : vector<30x256xf32> to vector<1x256xf32>
    %25 = arith.mulf %15, %16 : vector<1x256xf32>
    %26 = arith.mulf %23, %24 : vector<1x256xf32>
    %cst_6 = arith.constant 5.000000e-01 : f32
    %27 = vector.broadcast %cst_6 : f32 to vector<1x256xf32>
    %28 = arith.mulf %27, %15 : vector<1x256xf32>
    %29 = arith.subf %11, %28 : vector<1x256xf32>
    %cst_7 = arith.constant 5.000000e-01 : f32
    %30 = vector.broadcast %cst_7 : f32 to vector<1x256xf32>
    %31 = arith.mulf %30, %23 : vector<1x256xf32>
    %32 = arith.subf %19, %31 : vector<1x256xf32>
    %33 = arith.maximumf %29, %32 : vector<1x256xf32>
    %cst_8 = arith.constant 5.000000e-01 : f32
    %34 = vector.broadcast %cst_8 : f32 to vector<1x256xf32>
    %35 = arith.mulf %34, %15 : vector<1x256xf32>
    %36 = arith.addf %11, %35 : vector<1x256xf32>
    %cst_9 = arith.constant 5.000000e-01 : f32
    %37 = vector.broadcast %cst_9 : f32 to vector<1x256xf32>
    %38 = arith.mulf %37, %23 : vector<1x256xf32>
    %39 = arith.addf %19, %38 : vector<1x256xf32>
    %40 = arith.minimumf %36, %39 : vector<1x256xf32>
    %cst_10 = arith.constant 5.000000e-01 : f32
    %41 = vector.broadcast %cst_10 : f32 to vector<1x256xf32>
    %42 = arith.mulf %41, %16 : vector<1x256xf32>
    %43 = arith.subf %14, %42 : vector<1x256xf32>
    %cst_11 = arith.constant 5.000000e-01 : f32
    %44 = vector.broadcast %cst_11 : f32 to vector<1x256xf32>
    %45 = arith.mulf %44, %24 : vector<1x256xf32>
    %46 = arith.subf %22, %45 : vector<1x256xf32>
    %47 = arith.maximumf %43, %46 : vector<1x256xf32>
    %cst_12 = arith.constant 5.000000e-01 : f32
    %48 = vector.broadcast %cst_12 : f32 to vector<1x256xf32>
    %49 = arith.mulf %48, %16 : vector<1x256xf32>
    %50 = arith.addf %14, %49 : vector<1x256xf32>
    %cst_13 = arith.constant 5.000000e-01 : f32
    %51 = vector.broadcast %cst_13 : f32 to vector<1x256xf32>
    %52 = arith.mulf %51, %24 : vector<1x256xf32>
    %53 = arith.addf %22, %52 : vector<1x256xf32>
    %54 = arith.minimumf %50, %53 : vector<1x256xf32>
    %55 = arith.subf %40, %33 : vector<1x256xf32>
    %56 = arith.subf %54, %47 : vector<1x256xf32>
    %57 = arith.mulf %55, %56 : vector<1x256xf32>
    %58 = arith.addf %25, %26 : vector<1x256xf32>
    %59 = arith.subf %58, %57 : vector<1x256xf32>
    %60 = tpu.reciprocal %59 {approx = true} : vector<1x256xf32> -> vector<1x256xf32>
    %61 = arith.mulf %59, %60 : vector<1x256xf32>
    %cst_14 = arith.constant 2.000000e+00 : f32
    %62 = vector.broadcast %cst_14 : f32 to vector<1x256xf32>
    %63 = arith.subf %62, %61 : vector<1x256xf32>
    %64 = arith.mulf %60, %63 : vector<1x256xf32>
    %65 = arith.cmpf oge, %33, %40 : vector<1x256xf32>
    %66 = arith.cmpf oge, %47, %54 : vector<1x256xf32>
    %67 = arith.ori %65, %66 : vector<1x256xi1>
    %68 = arith.mulf %57, %64 : vector<1x256xf32>
    %cst_15 = arith.constant 0.000000e+00 : f32
    %69 = vector.broadcast %cst_15 : f32 to vector<1x256xf32>
    %70 = arith.select %67, %69, %68 : vector<1x256xi1>, vector<1x256xf32>
    %71 = vector.extract_strided_slice %4 {offsets = [5, 0], sizes = [1, 256], strides = [1, 1]} : vector<30x256xf32> to vector<1x256xf32>
    %cst_16 = arith.constant 0.142857149 : f32
    %72 = vector.broadcast %cst_16 : f32 to vector<1x256xf32>
    %73 = arith.mulf %71, %72 : vector<1x256xf32>
    %74 = vector.extract_strided_slice %4 {offsets = [6, 0], sizes = [1, 256], strides = [1, 1]} : vector<30x256xf32> to vector<1x256xf32>
    %cst_17 = arith.constant 0.142857149 : f32
    %75 = vector.broadcast %cst_17 : f32 to vector<1x256xf32>
    %76 = arith.mulf %74, %75 : vector<1x256xf32>
    %77 = vector.extract_strided_slice %4 {offsets = [7, 0], sizes = [1, 256], strides = [1, 1]} : vector<30x256xf32> to vector<1x256xf32>
    %78 = vector.extract_strided_slice %4 {offsets = [8, 0], sizes = [1, 256], strides = [1, 1]} : vector<30x256xf32> to vector<1x256xf32>
    %79 = vector.extract_strided_slice %6 {offsets = [0, 0], sizes = [1, 256], strides = [1, 1]} : vector<30x256xf32> to vector<1x256xf32>
    %cst_18 = arith.constant 0.142857149 : f32
    %80 = vector.broadcast %cst_18 : f32 to vector<1x256xf32>
    %81 = arith.mulf %79, %80 : vector<1x256xf32>
    %82 = vector.extract_strided_slice %6 {offsets = [1, 0], sizes = [1, 256], strides = [1, 1]} : vector<30x256xf32> to vector<1x256xf32>
    %cst_19 = arith.constant 0.142857149 : f32
    %83 = vector.broadcast %cst_19 : f32 to vector<1x256xf32>
    %84 = arith.mulf %82, %83 : vector<1x256xf32>
    %85 = vector.extract_strided_slice %6 {offsets = [2, 0], sizes = [1, 256], strides = [1, 1]} : vector<30x256xf32> to vector<1x256xf32>
    %86 = vector.extract_strided_slice %6 {offsets = [3, 0], sizes = [1, 256], strides = [1, 1]} : vector<30x256xf32> to vector<1x256xf32>
    %87 = arith.mulf %77, %78 : vector<1x256xf32>
    %88 = arith.mulf %85, %86 : vector<1x256xf32>
    %cst_20 = arith.constant 5.000000e-01 : f32
    %89 = vector.broadcast %cst_20 : f32 to vector<1x256xf32>
    %90 = arith.mulf %89, %77 : vector<1x256xf32>
    %91 = arith.subf %73, %90 : vector<1x256xf32>
    %cst_21 = arith.constant 5.000000e-01 : f32
    %92 = vector.broadcast %cst_21 : f32 to vector<1x256xf32>
    %93 = arith.mulf %92, %85 : vector<1x256xf32>
    %94 = arith.subf %81, %93 : vector<1x256xf32>
    %95 = arith.maximumf %91, %94 : vector<1x256xf32>
    %cst_22 = arith.constant 5.000000e-01 : f32
    %96 = vector.broadcast %cst_22 : f32 to vector<1x256xf32>
    %97 = arith.mulf %96, %77 : vector<1x256xf32>
    %98 = arith.addf %73, %97 : vector<1x256xf32>
    %cst_23 = arith.constant 5.000000e-01 : f32
    %99 = vector.broadcast %cst_23 : f32 to vector<1x256xf32>
    %100 = arith.mulf %99, %85 : vector<1x256xf32>
    %101 = arith.addf %81, %100 : vector<1x256xf32>
    %102 = arith.minimumf %98, %101 : vector<1x256xf32>
    %cst_24 = arith.constant 5.000000e-01 : f32
    %103 = vector.broadcast %cst_24 : f32 to vector<1x256xf32>
    %104 = arith.mulf %103, %78 : vector<1x256xf32>
    %105 = arith.subf %76, %104 : vector<1x256xf32>
    %cst_25 = arith.constant 5.000000e-01 : f32
    %106 = vector.broadcast %cst_25 : f32 to vector<1x256xf32>
    %107 = arith.mulf %106, %86 : vector<1x256xf32>
    %108 = arith.subf %84, %107 : vector<1x256xf32>
    %109 = arith.maximumf %105, %108 : vector<1x256xf32>
    %cst_26 = arith.constant 5.000000e-01 : f32
    %110 = vector.broadcast %cst_26 : f32 to vector<1x256xf32>
    %111 = arith.mulf %110, %78 : vector<1x256xf32>
    %112 = arith.addf %76, %111 : vector<1x256xf32>
    %cst_27 = arith.constant 5.000000e-01 : f32
    %113 = vector.broadcast %cst_27 : f32 to vector<1x256xf32>
    %114 = arith.mulf %113, %86 : vector<1x256xf32>
    %115 = arith.addf %84, %114 : vector<1x256xf32>
    %116 = arith.minimumf %112, %115 : vector<1x256xf32>
    %117 = arith.subf %102, %95 : vector<1x256xf32>
    %118 = arith.subf %116, %109 : vector<1x256xf32>
    %119 = arith.mulf %117, %118 : vector<1x256xf32>
    %120 = arith.addf %87, %88 : vector<1x256xf32>
    %121 = arith.subf %120, %119 : vector<1x256xf32>
    %122 = tpu.reciprocal %121 {approx = true} : vector<1x256xf32> -> vector<1x256xf32>
    %123 = arith.mulf %121, %122 : vector<1x256xf32>
    %cst_28 = arith.constant 2.000000e+00 : f32
    %124 = vector.broadcast %cst_28 : f32 to vector<1x256xf32>
    %125 = arith.subf %124, %123 : vector<1x256xf32>
    %126 = arith.mulf %122, %125 : vector<1x256xf32>
    %127 = arith.cmpf oge, %95, %102 : vector<1x256xf32>
    %128 = arith.cmpf oge, %109, %116 : vector<1x256xf32>
    %129 = arith.ori %127, %128 : vector<1x256xi1>
    %130 = arith.mulf %119, %126 : vector<1x256xf32>
    %cst_29 = arith.constant 0.000000e+00 : f32
    %131 = vector.broadcast %cst_29 : f32 to vector<1x256xf32>
    %132 = arith.select %129, %131, %130 : vector<1x256xi1>, vector<1x256xf32>
    %133 = arith.cmpf ogt, %70, %132 : vector<1x256xf32>
    %134 = arith.subf %4, %6 : vector<30x256xf32>
    %135 = arith.mulf %134, %134 : vector<30x256xf32>
    %136 = vector.extract_strided_slice %135 {offsets = [0, 0], sizes = [2, 256], strides = [1, 1]} : vector<30x256xf32> to vector<2x256xf32>
    %cst_30 = arith.constant dense<0.000000e+00> : vector<256xf32>
    %137 = vector.multi_reduction <add>, %136, %cst_30 [0] : vector<2x256xf32> to vector<256xf32>
    %138 = vector.shape_cast %137 : vector<256xf32> to vector<1x256xf32>
    %cst_31 = arith.constant 5.000000e+00 : f32
    %139 = vector.broadcast %cst_31 : f32 to vector<1x256xf32>
    %140 = arith.mulf %139, %138 : vector<1x256xf32>
    %141 = vector.extract_strided_slice %135 {offsets = [5, 0], sizes = [2, 256], strides = [1, 1]} : vector<30x256xf32> to vector<2x256xf32>
    %cst_32 = arith.constant dense<0.000000e+00> : vector<256xf32>
    %142 = vector.multi_reduction <add>, %141, %cst_32 [0] : vector<2x256xf32> to vector<256xf32>
    %143 = vector.shape_cast %142 : vector<256xf32> to vector<1x256xf32>
    %cst_33 = arith.constant 5.000000e+00 : f32
    %144 = vector.broadcast %cst_33 : f32 to vector<1x256xf32>
    %145 = arith.mulf %144, %143 : vector<1x256xf32>
    %146 = vector.extract_strided_slice %135 {offsets = [10, 0], sizes = [20, 256], strides = [1, 1]} : vector<30x256xf32> to vector<20x256xf32>
    %cst_34 = arith.constant dense<0.000000e+00> : vector<256xf32>
    %147 = vector.multi_reduction <add>, %146, %cst_34 [0] : vector<20x256xf32> to vector<256xf32>
    %148 = vector.shape_cast %147 : vector<256xf32> to vector<1x256xf32>
    %149 = vector.extract_strided_slice %4 {offsets = [2, 0], sizes = [2, 256], strides = [1, 1]} : vector<30x256xf32> to vector<2x256xf32>
    %cst_35 = arith.constant 0.000000e+00 : f32
    %150 = vector.broadcast %cst_35 : f32 to vector<2x256xf32>
    %151 = arith.maximumf %149, %150 : vector<2x256xf32>
    %152 = math.sqrt %151 : vector<2x256xf32>
    %153 = vector.extract_strided_slice %6 {offsets = [2, 0], sizes = [2, 256], strides = [1, 1]} : vector<30x256xf32> to vector<2x256xf32>
    %cst_36 = arith.constant 0.000000e+00 : f32
    %154 = vector.broadcast %cst_36 : f32 to vector<2x256xf32>
    %155 = arith.maximumf %153, %154 : vector<2x256xf32>
    %156 = math.sqrt %155 : vector<2x256xf32>
    %157 = arith.subf %152, %156 : vector<2x256xf32>
    %158 = arith.mulf %157, %157 : vector<2x256xf32>
    %cst_37 = arith.constant dense<0.000000e+00> : vector<256xf32>
    %159 = vector.multi_reduction <add>, %158, %cst_37 [0] : vector<2x256xf32> to vector<256xf32>
    %160 = vector.shape_cast %159 : vector<256xf32> to vector<1x256xf32>
    %161 = vector.extract_strided_slice %4 {offsets = [7, 0], sizes = [2, 256], strides = [1, 1]} : vector<30x256xf32> to vector<2x256xf32>
    %cst_38 = arith.constant 0.000000e+00 : f32
    %162 = vector.broadcast %cst_38 : f32 to vector<2x256xf32>
    %163 = arith.maximumf %161, %162 : vector<2x256xf32>
    %164 = math.sqrt %163 : vector<2x256xf32>
    %165 = vector.extract_strided_slice %6 {offsets = [7, 0], sizes = [2, 256], strides = [1, 1]} : vector<30x256xf32> to vector<2x256xf32>
    %cst_39 = arith.constant 0.000000e+00 : f32
    %166 = vector.broadcast %cst_39 : f32 to vector<2x256xf32>
    %167 = arith.maximumf %165, %166 : vector<2x256xf32>
    %168 = math.sqrt %167 : vector<2x256xf32>
    %169 = arith.subf %164, %168 : vector<2x256xf32>
    %170 = arith.mulf %169, %169 : vector<2x256xf32>
    %cst_40 = arith.constant dense<0.000000e+00> : vector<256xf32>
    %171 = vector.multi_reduction <add>, %170, %cst_40 [0] : vector<2x256xf32> to vector<256xf32>
    %172 = vector.shape_cast %171 : vector<256xf32> to vector<1x256xf32>
    %173 = vector.extract_strided_slice %4 {offsets = [4, 0], sizes = [1, 256], strides = [1, 1]} : vector<30x256xf32> to vector<1x256xf32>
    %174 = vector.extract_strided_slice %4 {offsets = [9, 0], sizes = [1, 256], strides = [1, 1]} : vector<30x256xf32> to vector<1x256xf32>
    %175 = arith.subf %173, %70 : vector<1x256xf32>
    %176 = arith.mulf %175, %175 : vector<1x256xf32>
    %177 = arith.subf %174, %132 : vector<1x256xf32>
    %178 = arith.mulf %177, %177 : vector<1x256xf32>
    %179 = arith.addf %140, %160 : vector<1x256xf32>
    %180 = arith.addf %179, %176 : vector<1x256xf32>
    %cst_41 = arith.constant 5.000000e-01 : f32
    %181 = vector.broadcast %cst_41 : f32 to vector<1x256xf32>
    %182 = arith.mulf %181, %178 : vector<1x256xf32>
    %183 = arith.addf %180, %182 : vector<1x256xf32>
    %184 = arith.addf %145, %172 : vector<1x256xf32>
    %185 = arith.addf %184, %178 : vector<1x256xf32>
    %cst_42 = arith.constant 5.000000e-01 : f32
    %186 = vector.broadcast %cst_42 : f32 to vector<1x256xf32>
    %187 = arith.mulf %186, %176 : vector<1x256xf32>
    %188 = arith.addf %185, %187 : vector<1x256xf32>
    %189 = arith.select %133, %183, %188 : vector<1x256xi1>, vector<1x256xf32>
    %190 = arith.addf %189, %148 : vector<1x256xf32>
    %191 = arith.mulf %173, %173 : vector<1x256xf32>
    %192 = arith.mulf %174, %174 : vector<1x256xf32>
    %193 = arith.addf %191, %192 : vector<1x256xf32>
    %cst_43 = arith.constant 5.000000e-01 : f32
    %194 = vector.broadcast %cst_43 : f32 to vector<1x256xf32>
    %195 = arith.mulf %194, %193 : vector<1x256xf32>
    %196 = vector.extract_strided_slice %6 {offsets = [4, 0], sizes = [1, 256], strides = [1, 1]} : vector<30x256xf32> to vector<1x256xf32>
    %cst_44 = arith.constant 1.000000e+00 : f32
    %197 = vector.broadcast %cst_44 : f32 to vector<1x256xf32>
    %198 = arith.cmpf oeq, %196, %197 : vector<1x256xf32>
    %199 = arith.select %198, %190, %195 : vector<1x256xi1>, vector<1x256xf32>
    %200 = tpu.iota {dimensions = array<i32: 1>} : vector<1x256xi32>
    %201 = vector.broadcast %8 : i32 to vector<1x256xi32>
    %202 = arith.addi %201, %200 : vector<1x256xi32>
    %c98_i32 = arith.constant 98 : i32
    %203 = vector.broadcast %c98_i32 : i32 to vector<1x256xi32>
    %204 = arith.cmpi slt, %202, %203 : vector<1x256xi32>
    %cst_45 = arith.constant 0.000000e+00 : f32
    %205 = vector.broadcast %cst_45 : f32 to vector<1x256xf32>
    %206 = arith.select %204, %199, %205 : vector<1x256xi1>, vector<1x256xf32>
    %207 = arith.addf %0, %206 : vector<1x256xf32>
    %c1_i32 = arith.constant 1 : i32
    %208 = vector.shape_cast %207 : vector<1x256xf32> to vector<1x1x256xf32>
    %cst_46 = arith.constant dense<0.000000e+00> : vector<1xf32>
    %209 = vector.multi_reduction <add>, %208, %cst_46 [1, 2] : vector<1x1x256xf32> to vector<1xf32>
    %210 = vector.shape_cast %209 : vector<1xf32> to vector<1x1x1xf32>
    %211 = vector.extract %210[0, 0, 0] : f32 from vector<1x1x1xf32>
    %212 = vector.broadcast %211 : f32 to vector<1x1xf32>
    %213 = vector.shape_cast %212 : vector<1x1xf32> to vector<1x1xf32>
    %214 = vector.broadcast %213 : vector<1x1xf32> to vector<8x128xf32>
    %c0_47 = arith.constant 0 : index
    %c0_48 = arith.constant 0 : index
    %215 = vector.load %arg3[%c0_47, %c0_48] : memref<8x128xf32, #tpu.memory_space<vmem>>, vector<8x128xf32>
    tpu.vector_store %arg3[%c0_47, %c0_48], %214 {strides = array<i32>} : memref<8x128xf32, #tpu.memory_space<vmem>>, vector<8x128xf32>,
    return
  }
  func.func @transform_0(%arg0: i32) -> (i32, i32) {
    %c0_i32 = arith.constant 0 : i32
    %c0_i32_0 = arith.constant 0 : i32
    return %c0_i32, %arg0 : i32, i32
  }
  func.func @transform_1(%arg0: i32) -> (i32, i32) {
    %c0_i32 = arith.constant 0 : i32
    %c0_i32_0 = arith.constant 0 : i32
    return %c0_i32, %arg0 : i32, i32
  }
  func.func @transform_2(%arg0: i32) -> (i32, i32) {
    %c0_i32 = arith.constant 0 : i32
    %c0_i32_0 = arith.constant 0 : i32
    return %arg0, %c0_i32 : i32, i32
  }
}

</mosaic_0001>

<bundles_post_ra>
// kernel: _yolo_loss_transposed.1
= control target key start
LH: loop header
LB: loop body
LE: loop exit
PB: predicated region body
PF: predicated region fallthrough
CT: control target
= control target key end

     0   :  { %vm247_vm0 = vcmask 1041408   ;;  %vm292_vm3 = vcmask 1045504   ;;  %vm310_vm6 = vcmask 1043456   ;;  %s754_s0 = inlined_call_operand.vmem [shape: f32[30,256], index: 0, kind: input, shape index: {}]   ;;  %s755_s1 = inlined_call_operand.vmem [shape: f32[30,256], index: 1, kind: input, shape index: {}]   ;;  %s756_s2 = inlined_call_operand.vmem [shape: f32[8,128], index: 2, kind: output, shape index: {}]  }
   0x1   :  { %v603_v0 = vld [vmem:[%s754_s0] sm:$0xff]  ;;  %v608_v1 = vld [vmem:[%s754_s0 + $0x10] sm:$0xff] }
   0x2   :  { %v613_v2 = vld [vmem:[%s755_s1] sm:$0xff]  ;;  %v29_v3 = vmul.f32 0.14285715, %v603_v0  ;;  %v49_v5 = vmul.f32 0.5, %v603_v0  ;;  %v149_v7 = vmul.f32 0.5, %v608_v1  ;;  %v35_v10 = vrot.slane %v603_v0, 1 }
   0x3   :  { %v31_v4 = vmul.f32 0.14285715, %v613_v2  ;;  %v59_v6 = vmul.f32 0.5, %v613_v2  ;;  %v43_v11 = vrot.slane %v613_v2, 1  ;;  %v127_v24 = vrot.slane %v608_v1, 1  ;;  %v15_v40 = vld [vmem:[%s754_s0 + $0x20] sm:$0xff] }
   0x4   :  { %v53_v8 = vrot.slane %v49_v5, 2  ;;  %v153_v12 = vrot.slane %v149_v7, 2  ;;  %v39_v25 = vmul.f32 %v35_v10, %v603_v0  ;;  %v231_v39 = vsub.f32 %v603_v0, %v613_v2  ;;  %v17_v41 = vld [vmem:[%s754_s0 + $0x30] sm:$0x3f]  ;;  %v23_v44 = vld [vmem:[%s755_s1 + $0x20] sm:$0xff] }
   0x5   :  { %v63_v9 = vrot.slane %v59_v6, 2  ;;  %v47_v23 = vmul.f32 %v43_v11, %v613_v2  ;;  %v131_v32 = vmul.f32 %v127_v24, %v603_v0  ;;  %v21_v43 = vld [vmem:[%s755_s1 + $0x10] sm:$0xff]  ;;  %v661_v48 = vmax.f32 %v603_v0, 0.0 }
   0x6   :  { %v57_v13 = vsub.f32 %v29_v3, %v53_v8  ;;  %v71_v15 = vadd.f32 %v53_v8, %v29_v3  ;;  %v157_v17 = vsub.f32 %v29_v3, %v153_v12  ;;  %v161_v18 = vadd.f32 %v153_v12, %v29_v3  ;;  %v25_v45 = vld [vmem:[%s755_s1 + $0x30] sm:$0x3f] }
   0x7   :  { %v67_v14 = vsub.f32 %v31_v4, %v63_v9  ;;  %v73_v16 = vadd.f32 %v63_v9, %v31_v4  ;;  %v179_v35 = vrot.slane %v47_v23, 3  ;;  %v87_v37 = vadd.f32 %v47_v23, %v39_v25 }
   0x8   :  { %v233_v50 = vsub.f32 %v608_v1, %v21_v43  ;;  %v239_v52 = vmul.f32 %v231_v39, %v231_v39  ;;  %v235_v53 = vsub.f32 %v15_v40, %v23_v44  ;;  %v237_v54 = vsub.f32 %v17_v41, %v25_v45 }
   0x9   :  { %v622_v19 = vmax.f32 %v57_v13, %v67_v14  ;;  %v624_v20 = vmin.f32 %v71_v15, %v73_v16  ;;  %v135_v21 = vrot.slane %v67_v14, 3  ;;  %v143_v22 = vrot.slane %v73_v16, 3 }
   0xa   :  { %v183_v47 = vadd.f32 %v179_v35, %v131_v32  ;;  %v241_v56 = vmul.f32 %v233_v50, %v233_v50  ;;  %v248_v57 = vsel %vm247_vm0, %v239_v52, 0.0  ;;  %v668_v58 = vmax.f32 %v613_v2, 0.0 }
   0xb   :  { %v77_v26 = vsub.f32 %v624_v20, %v622_v19  ;;  %v631_v27 = vmax.f32 %v57_v13, %v135_v21  ;;  %v633_v28 = vmin.f32 %v71_v15, %v143_v22  ;;  %v159_v29 = vmax.f32 %v157_v17, %v135_v21 }
   0xc   :  { %v163_v30 = vmin.f32 %v161_v18, %v143_v22  ;;  %v671_v59 = vmax.f32 %v608_v1, 0.0  ;;  %vm105_vm1 = vcmp.ge.f32.partialorder %v622_v19, %v624_v20  ;;  %v266_v60 = vrot.slane %v239_v52, 5 }
   0xd   :  { %v81_v31 = vrot.slane %v77_v26, 1  ;;  %v165_v33 = vsub.f32 %v633_v28, %v631_v27  ;;  %v675_v61 = vmax.f32 %v21_v43, 0.0  ;;  %v243_v62 = vmul.f32 %v235_v53, %v235_v53 }
   0xe   :  { %v167_v34 = vsub.f32 %v163_v30, %v159_v29  ;;  %vm203_vm2 = vcmp.ge.f32.partialorder %v159_v29, %v163_v30  ;;  %v245_v63 = vmul.f32 %v237_v54, %v237_v54  ;;  %v249_v3 = vrot.slane %v248_v57, 4 }
   0xf   :  { %v638_v36 = vmul.f32 %v81_v31, %v77_v26  ;;  %v583_v4 = vmov 0   ;;  %v270_v7 = vsel %vm247_vm0, %v266_v60, 0.0  ;;  %v293_v8 = vrot.slane %v241_v56, 2 }
  0x10   :  { %v171_v38 = vrot.slane %v167_v34, 1  ;;  %v107_v5 = vsel %vm105_vm1, 1, %v583_v4  ;;  %v205_v6 = vsel %vm203_vm2, 1, %v583_v4  ;;  %v294_v9 = vrot.slane %v243_v62, 2 }
  0x11   :  { %v91_v42 = vrot.slane %v638_v36, 6  ;;  %v299_v10 = vrot.slane %v245_v63, 2  ;;  %v109_v11 = vrot.slane %v107_v5, 1  ;;  %v250_v12 = vadd.f32 %v249_v3, %v248_v57 }
  0x12   :  { %v658_v46 = vmul.f32 %v171_v38, %v165_v33  ;;  %v207_v13 = vrot.slane %v205_v6, 1  ;;  %v271_v14 = vrot.slane %v270_v7, 4  ;;  %v295_v15 = vsel %vm292_vm3, %v293_v8, %v294_v9 }
  0x13   :  { %v95_v49 = vsub.f32 %v87_v37, %v91_v42  ;;  %v300_v16 = vsel %vm292_vm3, %v294_v9, %v299_v10  ;;  %vm684_vm4 = vcmp.ne.s32.totalorder %v109_v11, 0  ;;  %vm201_vm5 = vcmp.ge.f32.partialorder %v631_v27, %v633_v28 }
  0x14   :  { %v187_v51 = vrot.slane %v658_v46, 6  ;;  %v251_v21 = vrot.slane %v250_v12, 2  ;;  %vm690_vm7 = vcmp.ne.s32.totalorder %v207_v13, 0  ;;  %v272_v25 = vadd.f32 %v271_v14, %v270_v7  ;;  %vm113_vm2 = vmor %vm105_vm1, %vm684_vm4 }
  0x15   :  { %571 = vrcp.f32 %v95_v49  ;;  %vm332_vm8 = vcmp.eq.f32.partialorder %v661_v48, inf  ;;  %v309_v26 = vadd.f32 %v300_v16, %v295_v15  ;;  %vm334_vm9 = vcmp.eq.f32.partialorder %v661_v48, 0.0  ;;  %vm211_vm3 = vmor %vm201_vm5, %vm690_vm7 }
  0x16   :  { %v191_v55 = vsub.f32 %v183_v47, %v187_v51  ;;  %573 = vrsqrt.f32 %v661_v48  ;;  %v335_v30 = vand.u32 2147483648, %v661_v48  ;;  %vm348_vm10 = vcmp.eq.f32.partialorder %v668_v58, inf }
  0x17   :  { %vm350_vm11 = vcmp.eq.f32.partialorder %v668_v58, 0.0  ;;  %v351_v33 = vand.u32 2147483648, %v668_v58  ;;  %vm388_vm12 = vcmp.eq.f32.partialorder %v671_v59, inf  ;;  %vm390_vm13 = vcmp.eq.f32.partialorder %v671_v59, 0.0 }
  0x18   :  { %575 = vrcp.f32 %v191_v55  ;;  %v391_v41 = vand.u32 2147483648, %v671_v59  ;;  %vm404_vm14 = vcmp.eq.f32.partialorder %v675_v61, inf  ;;  %v407_v47 = vand.u32 2147483648, %v675_v61 }
  0x19   :  { %577 = vrsqrt.f32 %v668_v58  ;;  %vm406_vm15 = vcmp.eq.f32.partialorder %v675_v61, 0.0  ;;  %v311_v53 = vsel %vm310_vm6, %v299_v10, 0.0  ;;  %v273_v62 = vrot.slane %v272_v25, 2 }
  0x1a   :  { %579 = vrsqrt.f32 %v671_v59  ;;  %v312_v4 = vadd.f32 %v311_v53, %v309_v26  ;;  %vm422_vm1 = vcmask 1040384   ;;  %v507_v53 = vmul.f32 %v603_v0, %v603_v0 }
  0x1b   :  { %581 = vrsqrt.f32 %v675_v61  ;;  %v274_v8 = vadd.f32 %v273_v62, %v272_v25  ;;  %vm521_vm4 = vcmp.eq.f32.partialorder %v613_v2, 1.0 }
  0x1c   :  { %v313_v28 = vrot.slane %v312_v4, 4 }
  0x22   :  { %v572_v17 = vpop.eup %571 }
  0x23   :  { %v574_v22 = vpop.eup %573  ;;  %v99_v23 = vmul.f32 %v572_v17, %v95_v49 }
  0x24   :  { %v331_v29 = vmul.f32 %v574_v22, %v661_v48 }
  0x25   :  { %v576_v31 = vpop.eup %575  ;;  %v101_v32 = vsub.f32 2.0, %v99_v23  ;;  %v314_v23 = vadd.f32 %v313_v28, %v312_v4 }
  0x26   :  { %v578_v34 = vpop.eup %577  ;;  %v195_v35 = vmul.f32 %v576_v31, %v191_v55  ;;  %v333_v37 = vsel %vm332_vm8, %v661_v48, %v331_v29 }
  0x27   :  { %v580_v38 = vpop.eup %579  ;;  %v103_v39 = vmul.f32 %v572_v17, %v101_v32  ;;  %v347_v40 = vmul.f32 %v578_v34, %v668_v58  ;;  %v336_v44 = vsel %vm334_vm9, %v335_v30, %v333_v37  ;;  %v275_v17 = vrot.slane %v274_v8, 1 }
  0x28   :  { %v582_v42 = vpop.eup %581  ;;  %v197_v43 = vsub.f32 2.0, %v195_v35  ;;  %v387_v45 = vmul.f32 %v580_v38, %v671_v59  ;;  %v315_v34 = vrot.slane %v314_v23, 2 }
  0x29   :  { %v117_v49 = vrot.slane %v103_v39, 2  ;;  %v349_v50 = vsel %vm348_vm10, %v668_v58, %v347_v40  ;;  %v403_v51 = vmul.f32 %v582_v42, %v675_v61  ;;  %v276_v30 = vadd.f32 %v275_v17, %v274_v8 }
  0x2a   :  { %v199_v52 = vmul.f32 %v576_v31, %v197_v43  ;;  %v352_v48 = vsel %vm350_vm11, %v351_v33, %v349_v50  ;;  %v389_v54 = vsel %vm388_vm12, %v671_v59, %v387_v45  ;;  %v252_v59 = vadd.f32 %v251_v21, %v250_v12 }
  0x2b   :  { %v121_v55 = vmul.f32 %v117_v49, %v638_v36  ;;  %v360_v56 = vsub.f32 %v336_v44, %v352_v48  ;;  %v392_v57 = vsel %vm390_vm13, %v391_v41, %v389_v54  ;;  %v405_v58 = vsel %vm404_vm14, %v675_v61, %v403_v51 }
  0x2c   :  { %v215_v60 = vrot.slane %v199_v52, 2  ;;  %v408_v63 = vsel %vm406_vm15, %v407_v47, %v405_v58  ;;  %v253_v27 = vrot.slane %v252_v59, 1  ;;  %v284_v40 = vmul.f32 5.0, %v276_v30 }
  0x2d   :  { %v362_v19 = vmul.f32 %v360_v56, %v360_v56  ;;  %v416_v20 = vsub.f32 %v392_v57, %v408_v63  ;;  %v123_v36 = vsel %vm113_vm2, 0.0, %v121_v55  ;;  %v316_v43 = vadd.f32 %v315_v34, %v314_v23 }
  0x2e   :  { %v219_v3 = vmul.f32 %v215_v60, %v658_v46  ;;  %v447_v11 = vrot.slane %v123_v36, 4  ;;  %v254_v22 = vadd.f32 %v253_v27, %v252_v59  ;;  %v509_v47 = vmul.f32 %v608_v1, %v608_v1 }
  0x2f   :  { %v366_v5 = vrot.slane %v362_v19, 2  ;;  %v418_v6 = vmul.f32 %v416_v20, %v416_v20  ;;  %v423_v7 = vrot.slane %v362_v19, 7  ;;  %v317_v54 = vrot.slane %v316_v43, 1 }
  0x30   :  { %v221_v61 = vsel %vm211_vm3, 0.0, %v219_v3  ;;  %v451_v21 = vsub.f32 %v603_v0, %v447_v11  ;;  %v262_v33 = vmul.f32 5.0, %v254_v22  ;;  %v513_v56 = vrot.slane %v509_v47, 5 }
  0x31   :  { %v370_v9 = vsel %vm247_vm0, %v366_v5, 0.0  ;;  %v424_v10 = vrot.slane %v418_v6, 7  ;;  %v455_v13 = vrot.slane %v221_v61, 4  ;;  %v225_v48 = vrot.slane %v221_v61, 5 }
  0x32   :  { %v371_v14 = vrot.slane %v370_v9, 4  ;;  %v453_v32 = vmul.f32 %v451_v21, %v451_v21  ;;  %v531_v58 = vlaneseq  ;;  %v318_v63 = vadd.f32 %v317_v54, %v316_v43 }
  0x33   :  { %v425_v15 = vsel %vm422_vm1, %v423_v7, %v424_v10  ;;  %v459_v46 = vsub.f32 %v608_v1, %v455_v13  ;;  %v517_v19 = vadd.f32 %v513_v56, %v507_v53  ;;  %v584_v0 = vmov 0.0  }
  0x34   :  { %v372_v12 = vadd.f32 %v371_v14, %v370_v9  ;;  %v431_v16 = vsel %vm247_vm0, %v425_v15, 0.0  ;;  %v481_v42 = vmul.f32 0.5, %v453_v32  ;;  %vm229_vm0 = vcmp.gt.f32.partialorder %v123_v36, %v225_v48 }
  0x35   :  { %v432_v18 = vrot.slane %v431_v16, 4  ;;  %v461_v25 = vmul.f32 %v459_v46, %v459_v46  ;;  %v532_v1 = vand.u32 127, %v531_v58  ;;  %v519_v4 = vmul.f32 0.5, %v517_v19 }
  0x36   :  { %v373_v24 = vrot.slane %v372_v12, 2  ;;  %v485_v52 = vrot.slane %v481_v42, 3  ;;  %v546_v6 = vrot.slane %v584_v0, 4 }
  0x37   :  { %v433_v26 = vadd.f32 %v432_v18, %v431_v16  ;;  %v467_v37 = vmul.f32 0.5, %v461_v25  ;;  %vm537_vm5 = vcmp.lt.s32.totalorder %v532_v1, 98 }
  0x38   :  { %v374_v29 = vadd.f32 %v373_v24, %v372_v12  ;;  %v550_v9 = vsel %vm422_vm1, %v546_v6, 0.0 }
  0x39   :  { %v434_v31 = vrot.slane %v433_v26, 2  ;;  %v471_v45 = vrot.slane %v467_v37, 5 }
  0x3a   :  { %v375_v35 = vrot.slane %v374_v29, 1 }
  0x3b   :  { %v435_v38 = vadd.f32 %v434_v31, %v433_v26 }
  0x3c   :  { %v376_v39 = vadd.f32 %v375_v35, %v374_v29 }
  0x3d   :  { %v436_v41 = vrot.slane %v435_v38, 1 }
  0x3e   :  { %v463_v44 = vadd.f32 %v376_v39, %v262_v33 }
  0x3f   :  { %v437_v49 = vadd.f32 %v436_v41, %v435_v38 }
  0x40   :  { %v465_v50 = vadd.f32 %v463_v44, %v453_v32 }
  0x41   :  { %v477_v51 = vadd.f32 %v437_v49, %v284_v40 }
  0x42   :  { %v475_v55 = vadd.f32 %v471_v45, %v465_v50 }
  0x43   :  { %v479_v57 = vadd.f32 %v477_v51, %v461_v25 }
  0x44   :  { %v493_v62 = vrot.slane %v475_v55, 4 }
  0x45   :  { %v489_v60 = vadd.f32 %v485_v52, %v479_v57 }
  0x47   :  { %v499_v20 = vrot.slane %v489_v60, 1 }
  0x49   :  { %v503_v3 = vsel %vm229_vm0, %v493_v62, %v499_v20 }
  0x4a   :  { %v505_v59 = vadd.f32 %v503_v3, %v318_v63 }
  0x4c   :  { %v525_v5 = vrot.slane %v505_v59, 4 }
  0x4e   :  { %v529_v7 = vsel %vm521_vm4, %v525_v5, %v519_v4 }
  0x4f   :  { %v539_v61 = vsel %vm537_vm5, %v529_v7, 0.0 }
  0x50   :  { %v545_v8 = vrot.slane %v539_v61, 4 }
  0x52   :  { %v549_v36 = vsel %vm422_vm1, %v545_v8, 0.0 }
  0x53   :  { %v551_v10 = vadd.f32 %v550_v9, %v549_v36 }
  0x55   :  { %552 = vadd.xlane.f32.xlu0 %v551_v10 }
  0xde   :  { %v553_v11 = vpop.xlane.xlu0 %552 }
  0xdf   :  { %v554_v13 = vrot.slane %v553_v11, 4 }
  0xe1   :  { %v555_v27 = vadd.f32 %v554_v13, %v553_v11 }
  0xe3   :  { %v556_v28 = vrot.slane %v555_v27, 2 }
  0xe5   :  { %v557_v14 = vadd.f32 %v556_v28, %v555_v27 }
  0xe7   :  { %v558_v15 = vrot.slane %v557_v14, 1 }
  0xe9   :  { %v559_v2 = vadd.f32 %v558_v15, %v557_v14 }
  0xeb   :  { %567 = vpush %v559_v2 }
 0x11c   :  { %s568_s0 = spop %567 }
 0x11d   :  { %v561_v46 = vstv %s568_s0 }
 0x11e   :  { %562 = vst [vmem:[%s756_s2] sm:$0xff] %v561_v46 }

</bundles_post_ra>
